<compile_context>
chip_gen: v7x
topology: tpu7x:2x2x1
jax: 0.10.0
libtpu: 0.0.40
codegen_flags: <defaults>
</compile_context>

<pallas_src>
import functools

import jax
import jax.numpy as jnp
from jax.experimental import pallas as pl
from jax.experimental.pallas import tpu as pltpu

_MIB = 1024 * 1024


def _round_up(a: int, b: int) -> int:
    return (a + b - 1) // b * b


def _vmem_capacity_bytes() -> int:
    try:
        info = pltpu.get_tpu_info()
        cap = int(getattr(info, "vmem_capacity_bytes", 0))
        if cap > 0:
            return cap
    except Exception:
        pass
    return 64 * _MIB  # conservative: smallest per-TC VMEM (v7x)


def _largest_aligned_divisor(n: int, align: int, cap: int):
    """Largest d <= cap with d % align == 0 and n % d == 0, or None."""
    best = None
    d = align
    limit = min(n, cap)
    while d <= limit:
        if n % d == 0:
            best = d
        d += align
    return best


def _working_set_bytes(tm, th, E, H_pad, w_isz, x_isz, o_isz, resident):
    acc = tm * E * 4                      # f32 accumulator scratch
    xbuf = 2 * tm * E * x_isz             # x tile, double buffered
    obuf = 2 * tm * E * o_isz             # out tile, double buffered
    tmp = 2 * tm * th * 4                 # f32 hidden-tile temporaries
    b2buf = 2 * E * 4
    if resident:
        wbuf = 2 * (E * H_pad * w_isz + H_pad * E * w_isz + H_pad * 4)
    else:
        wbuf = 2 * (E * th * w_isz + th * E * w_isz + th * 4)
    return acc + xbuf + obuf + tmp + b2buf + wbuf


def _gelu_tanh(h):
    # tanh-approximation GELU, matching the PyTorch module; kept in f32.
    c = jnp.float32(0.7978845608028654)  # sqrt(2/pi)
    return 0.5 * h * (1.0 + jnp.tanh(c * (h + 0.044715 * (h * h * h))))


def _ffn_kernel_stream(x_ref, w1_ref, b1_ref, w2_ref, b2_ref, o_ref, acc_ref):
    # x_ref:(TM,E) w1_ref:(E,TH) b1_ref:(1,TH) w2_ref:(TH,E) b2_ref:(1,E)
    k = pl.program_id(1)

    @pl.when(k == 0)
    def _():
        acc_ref[...] = jnp.broadcast_to(
            b2_ref[...].astype(jnp.float32), acc_ref.shape)

    h = jnp.dot(x_ref[...], w1_ref[...], preferred_element_type=jnp.float32)
    h = _gelu_tanh(h + b1_ref[...].astype(jnp.float32))
    acc_ref[...] += jnp.dot(h.astype(w2_ref.dtype), w2_ref[...],
                            preferred_element_type=jnp.float32)

    @pl.when(k == pl.num_programs(1) - 1)
    def _():
        o_ref[...] = acc_ref[...].astype(o_ref.dtype)


def _ffn_kernel_resident(x_ref, w1_ref, b1_ref, w2_ref, b2_ref, o_ref, acc_ref,
                         *, th):
    # Weights are VMEM-resident (full-extent blocks, DMA'd once); slice the
    # current H chunk with 128-aligned dynamic slices.
    k = pl.program_id(1)

    @pl.when(k == 0)
    def _():
        acc_ref[...] = jnp.broadcast_to(
            b2_ref[...].astype(jnp.float32), acc_ref.shape)

    off = pl.multiple_of(k * th, 128)
    w1_t = w1_ref[:, pl.ds(off, th)]
    b1_t = b1_ref[:, pl.ds(off, th)]
    w2_t = w2_ref[pl.ds(off, th), :]

    h = jnp.dot(x_ref[...], w1_t, preferred_element_type=jnp.float32)
    h = _gelu_tanh(h + b1_t.astype(jnp.float32))
    acc_ref[...] += jnp.dot(h.astype(w2_t.dtype), w2_t,
                            preferred_element_type=jnp.float32)

    @pl.when(k == pl.num_programs(1) - 1)
    def _():
        o_ref[...] = acc_ref[...].astype(o_ref.dtype)


def feed_forward(x, w1, b1, w2, b2, *, tm=None, th=None,
                 compute_dtype=None, weights_resident=None):
    """x: [B, S, E]; w1: [E, 4E]; b1: [4E]; w2: [4E, E]; b2: [E].

    Weights stored [in, out] (PyTorch W.T).  compute_dtype (e.g. bf16) casts
    x/w1/w2 for the matmuls; accumulation stays f32 and output keeps x.dtype.
    """
    B, S, E = x.shape
    H = w1.shape[1]
    M = B * S
    out_dtype = x.dtype

    if compute_dtype is not None:
        x = x.astype(compute_dtype)
        w1 = w1.astype(compute_dtype)
        w2 = w2.astype(compute_dtype)
    b1 = b1.astype(jnp.float32)
    b2 = b2.astype(jnp.float32)

    x_isz = x.dtype.itemsize
    w_isz = w1.dtype.itemsize
    o_isz = jnp.dtype(out_dtype).itemsize

    cap = _vmem_capacity_bytes()
    budget = int(cap * 0.7)
    vmem_limit = int(max(32 * _MIB, min(cap * 0.9, 128 * _MIB)))

    # ---- H tiling: TH multiple of 128 that divides H_pad (no extra padding) ----
    H_pad = _round_up(H, 128)
    th_cap = th if th is not None else (1024 if w_isz <= 2 else 512)
    th_cap = max(128, _round_up(th_cap, 128))
    TH = _largest_aligned_divisor(H_pad, 128, th_cap) or 128

    # ---- M tiling: prefer a divisor of M (avoids jnp.pad of x), else pad ----
    tm_cap = tm if tm is not None else (1024 if cap >= 100 * _MIB else 512)
    tm_cap = max(8, _round_up(tm_cap, 8))
    full = min(tm_cap, _round_up(M, 8))
    div = _largest_aligned_divisor(M, 8, tm_cap)
    TM = div if (div is not None and div >= full // 2) else full
    # Prefer >= 2 M tiles so megacore / v7x dual-TC sharding has work for both cores.
    if _round_up(M, TM) // TM < 2 and M >= 16:
        half = _largest_aligned_divisor(M, 8, max(8, M // 2))
        TM = half if half is not None else _round_up((M + 1) // 2, 8)

    # ---- residency decision + VMEM-budget fitting ----
    def ws(tm_, th_, res_):
        return _working_set_bytes(tm_, th_, E, H_pad, w_isz, x_isz, o_isz, res_)

    if weights_resident is None:
        resident = ws(TM, TH, True) <= budget
    else:
        resident = bool(weights_resident)

    # Shrink TH first (per-step overhead), then TM (weight re-stream factor).
    while ws(TM, TH, resident) > budget and TH > 256:
        nxt = _largest_aligned_divisor(H_pad, 128, TH // 2)
        if not nxt or nxt >= TH:
            break
        TH = nxt
    while ws(TM, TH, resident) > budget and TM % 16 == 0:
        TM //= 2
    while ws(TM, TH, resident) > budget and TH > 128:
        nxt = _largest_aligned_divisor(H_pad, 128, TH // 2)
        if not nxt or nxt >= TH:
            break
        TH = nxt
    if resident and weights_resident is None and ws(TM, TH, True) > budget:
        resident = False  # fall back to streamed weight tiles

    M_pad = _round_up(M, TM)

    # ---- pad (only when strictly necessary) ----
    x2d = x.reshape(M, E)
    if M_pad != M:
        x2d = jnp.pad(x2d, ((0, M_pad - M), (0, 0)))
    if H_pad != H:
        # Zero-padding the hidden dim is exact: gelu(0) = 0 contributes nothing.
        w1 = jnp.pad(w1, ((0, 0), (0, H_pad - H)))
        b1 = jnp.pad(b1, ((0, H_pad - H),))
        w2 = jnp.pad(w2, ((0, H_pad - H), (0, 0)))

    b1_2d = b1.reshape(1, H_pad)
    b2_2d = b2.reshape(1, E)

    grid = (M_pad // TM, H_pad // TH)

    if resident:
        kernel = functools.partial(_ffn_kernel_resident, th=TH)
        w1_spec = pl.BlockSpec((E, H_pad), lambda i, k: (0, 0))
        b1_spec = pl.BlockSpec((1, H_pad), lambda i, k: (0, 0))
        w2_spec = pl.BlockSpec((H_pad, E), lambda i, k: (0, 0))
    else:
        kernel = _ffn_kernel_stream
        w1_spec = pl.BlockSpec((E, TH), lambda i, k: (0, k))
        b1_spec = pl.BlockSpec((1, TH), lambda i, k: (0, k))
        w2_spec = pl.BlockSpec((TH, E), lambda i, k: (k, 0))

    cost = pl.CostEstimate(
        flops=4 * M * E * H,
        transcendentals=M * H,
        bytes_accessed=(M * E * x_isz + E * H * w_isz + H * 4
                        + H * E * w_isz + E * 4 + M * E * o_isz),
    )

    out2d = pl.pallas_call(
        kernel,
        out_shape=jax.ShapeDtypeStruct((M_pad, E), out_dtype),
        grid_spec=pltpu.PrefetchScalarGridSpec(
            num_scalar_prefetch=0,
            grid=grid,
            in_specs=[
                pl.BlockSpec((TM, E), lambda i, k: (i, 0)),   # x rows
                w1_spec,                                       # w1
                b1_spec,                                       # b1
                w2_spec,                                       # w2
                pl.BlockSpec((1, E), lambda i, k: (0, 0)),     # b2 (resident)
            ],
            out_specs=pl.BlockSpec((TM, E), lambda i, k: (i, 0)),
            scratch_shapes=[pltpu.VMEM((TM, E), jnp.float32)],
        ),
        compiler_params=pltpu.CompilerParams(
            dimension_semantics=("parallel", "arbitrary"),
            vmem_limit_bytes=vmem_limit,
        ),
        cost_estimate=cost,
    )(x2d, w1, b1_2d, w2, b2_2d)

    if M_pad != M:
        out2d = out2d[:M]
    return out2d.reshape(B, S, E)


def _reference(x, w1, b1, w2, b2):
    h = jnp.einsum("bse,eh->bsh", x, w1) + b1
    c = jnp.sqrt(2.0 / jnp.pi)
    h = 0.5 * h * (1.0 + jnp.tanh(c * (h + 0.044715 * h**3)))
    return jnp.einsum("bsh,he->bse", h, w2) + b2


if __name__ == "__main__":
    key = jax.random.PRNGKey(0)

    def make_params(k, B, S, E, H):
        kx, k1, k2, k3, k4 = jax.random.split(k, 5)
        x = jax.random.normal(kx, (B, S, E), dtype=jnp.float32)
        w1 = jax.random.normal(k1, (E, H), dtype=jnp.float32) * 0.02
        b1 = jax.random.normal(k2, (H,), dtype=jnp.float32) * 0.02
        w2 = jax.random.normal(k3, (H, E), dtype=jnp.float32) * 0.02
        b2 = jax.random.normal(k4, (E,), dtype=jnp.float32) * 0.02
        return x, w1, b1, w2, b2

    ka, kb = jax.random.split(key)

    # Config 1: the module's toy shape (EMBED_DIM=32 -> hidden 128), B=2, S=8.
    x, w1, b1, w2, b2 = make_params(ka, 2, 8, 32, 128)
    ref = _reference(x, w1, b1, w2, b2)

    out_res = feed_forward(x, w1, b1, w2, b2, weights_resident=True)
    jax.block_until_ready(out_res)
    assert out_res.shape == x.shape
    assert jnp.allclose(out_res, ref, atol=1e-5, rtol=1e-5)

    out_str = feed_forward(x, w1, b1, w2, b2, weights_resident=False)
    jax.block_until_ready(out_str)
    assert jnp.allclose(out_str, ref, atol=1e-5, rtol=1e-5)

    out_bf16 = feed_forward(x, w1, b1, w2, b2, compute_dtype=jnp.bfloat16)
    jax.block_until_ready(out_bf16)
    assert jnp.allclose(out_bf16, ref, atol=5e-3, rtol=5e-2)

    # Config 2: multi-tile grid (2 M tiles x 4 H tiles), both weight modes.
    x2, w12, b12, w22, b22 = make_params(kb, 2, 64, 128, 512)
    ref2 = _reference(x2, w12, b12, w22, b22)
    for res in (True, False):
        o2 = feed_forward(x2, w12, b12, w22, b22, tm=64, th=128,
                          weights_resident=res)
        jax.block_until_ready(o2)
        assert jnp.allclose(o2, ref2, atol=1e-4, rtol=1e-3)

    print("KERNEL_OK")
</pallas_src>

<mosaic_0001>
module attributes {stable_mosaic.version = 11 : i64} {
  func.func @_ffn_kernel_resident(%arg0: i32, %arg1: i32, %arg2: memref<8x32xf32, #tpu.memory_space<vmem>>, %arg3: memref<32x128xf32, #tpu.memory_space<vmem>>, %arg4: memref<1x128xf32, #tpu.memory_space<vmem>>, %arg5: memref<128x32xf32, #tpu.memory_space<vmem>>, %arg6: memref<1x32xf32, #tpu.memory_space<vmem>>, %arg7: memref<8x32xf32, #tpu.memory_space<vmem>>, %arg8: memref<8x32xf32, #tpu.memory_space<vmem>>) attributes {dimension_semantics = [#tpu.dimension_semantics<parallel>, #tpu.dimension_semantics<arbitrary>], iteration_bounds = array<i64: 2, 1>, scalar_prefetch = 0 : i64, scratch_operands = 1 : i64, tpu.core_type = #tpu.core_type<tc>, window_params = [{transform_indices = @transform_0, window_bounds = array<i64: 8, 32>}, {pipeline_mode = #tpu.pipeline_mode<synchronous>, transform_indices = @transform_1, window_bounds = array<i64: 32, 128>}, {pipeline_mode = #tpu.pipeline_mode<synchronous>, transform_indices = @transform_2, window_bounds = array<i64: 1, 128>}, {pipeline_mode = #tpu.pipeline_mode<synchronous>, transform_indices = @transform_3, window_bounds = array<i64: 128, 32>}, {pipeline_mode = #tpu.pipeline_mode<synchronous>, transform_indices = @transform_4, window_bounds = array<i64: 1, 32>}, {transform_indices = @transform_5, window_bounds = array<i64: 8, 32>}]} {
    %c0_i32 = arith.constant 0 : i32
    %0 = arith.cmpi eq, %arg1, %c0_i32 : i32
    %1 = arith.extui %0 : i1 to i32
    %c0_i32_0 = arith.constant 0 : i32
    %2 = arith.cmpi ne, %1, %c0_i32_0 : i32
    scf.if %2 {
      %c0_16 = arith.constant 0 : index
      %c0_17 = arith.constant 0 : index
      %35 = vector.load %arg6[%c0_16, %c0_17] : memref<1x32xf32, #tpu.memory_space<vmem>>, vector<1x32xf32>
      %36 = vector.shape_cast %35 : vector<1x32xf32> to vector<1x32xf32>
      %37 = vector.broadcast %36 : vector<1x32xf32> to vector<8x32xf32>
      %c0_18 = arith.constant 0 : index
      %c0_19 = arith.constant 0 : index
      %38 = vector.load %arg8[%c0_18, %c0_19] : memref<8x32xf32, #tpu.memory_space<vmem>>, vector<8x32xf32>
      tpu.vector_store %arg8[%c0_18, %c0_19], %37 {strides = array<i32>} : memref<8x32xf32, #tpu.memory_space<vmem>>, vector<8x32xf32>,
    } else {
    }
    %c128_i32 = arith.constant 128 : i32
    %3 = arith.muli %arg1, %c128_i32 : i32
    %4 = tpu.assume_multiple %3, 128 : i32
    %c0 = arith.constant 0 : index
    %5 = arith.index_cast %4 : i32 to index
    %6 = vector.load %arg3[%c0, %5] : memref<32x128xf32, #tpu.memory_space<vmem>>, vector<32x128xf32>
    %c0_1 = arith.constant 0 : index
    %7 = arith.index_cast %4 : i32 to index
    %8 = vector.load %arg4[%c0_1, %7] : memref<1x128xf32, #tpu.memory_space<vmem>>, vector<1x128xf32>
    %9 = arith.index_cast %4 : i32 to index
    %c0_2 = arith.constant 0 : index
    %10 = vector.load %arg5[%9, %c0_2] : memref<128x32xf32, #tpu.memory_space<vmem>>, vector<128x32xf32>
    %c0_3 = arith.constant 0 : index
    %c0_4 = arith.constant 0 : index
    %11 = vector.load %arg2[%c0_3, %c0_4] : memref<8x32xf32, #tpu.memory_space<vmem>>, vector<8x32xf32>
    %cst = arith.constant dense<0.000000e+00> : vector<8x128xf32>
    %12 = tpu.matmul %11, %6, %cst {dimension_numbers = #tpu.dot_dimension_numbers<[1], [0], [0], [1], [0, 0, 1, 1], [], []>} : vector<8x32xf32>, vector<32x128xf32>, vector<8x128xf32> -> vector<8x128xf32>
    %13 = vector.broadcast %8 : vector<1x128xf32> to vector<8x128xf32>
    %14 = arith.addf %12, %13 : vector<8x128xf32>
    %cst_5 = arith.constant 5.000000e-01 : f32
    %15 = vector.broadcast %cst_5 : f32 to vector<8x128xf32>
    %16 = arith.mulf %15, %14 : vector<8x128xf32>
    %17 = arith.mulf %14, %14 : vector<8x128xf32>
    %18 = arith.mulf %17, %14 : vector<8x128xf32>
    %cst_6 = arith.constant 4.471500e-02 : f32
    %19 = vector.broadcast %cst_6 : f32 to vector<8x128xf32>
    %20 = arith.mulf %19, %18 : vector<8x128xf32>
    %21 = arith.addf %14, %20 : vector<8x128xf32>
    %cst_7 = arith.constant 0.797884583 : f32
    %22 = vector.broadcast %cst_7 : f32 to vector<8x128xf32>
    %23 = arith.mulf %22, %21 : vector<8x128xf32>
    %24 = math.tanh %23 : vector<8x128xf32>
    %cst_8 = arith.constant 1.000000e+00 : f32
    %25 = vector.broadcast %cst_8 : f32 to vector<8x128xf32>
    %26 = arith.addf %25, %24 : vector<8x128xf32>
    %27 = arith.mulf %16, %26 : vector<8x128xf32>
    %c0_9 = arith.constant 0 : index
    %c0_10 = arith.constant 0 : index
    %28 = vector.load %arg8[%c0_9, %c0_10] : memref<8x32xf32, #tpu.memory_space<vmem>>, vector<8x32xf32>
    %cst_11 = arith.constant dense<0.000000e+00> : vector<8x32xf32>
    %29 = tpu.matmul %27, %10, %cst_11 {dimension_numbers = #tpu.dot_dimension_numbers<[1], [0], [0], [1], [0, 0, 1, 1], [], []>} : vector<8x128xf32>, vector<128x32xf32>, vector<8x32xf32> -> vector<8x32xf32>
    %30 = arith.addf %28, %29 : vector<8x32xf32>
    %c0_12 = arith.constant 0 : index
    %c0_13 = arith.constant 0 : index
    %31 = vector.load %arg8[%c0_12, %c0_13] : memref<8x32xf32, #tpu.memory_space<vmem>>, vector<8x32xf32>
    tpu.vector_store %arg8[%c0_12, %c0_13], %30 {strides = array<i32>} : memref<8x32xf32, #tpu.memory_space<vmem>>, vector<8x32xf32>,
    %c0_i32_14 = arith.constant 0 : i32
    %32 = arith.cmpi eq, %arg1, %c0_i32_14 : i32
    %33 = arith.extui %32 : i1 to i32
    %c0_i32_15 = arith.constant 0 : i32
    %34 = arith.cmpi ne, %33, %c0_i32_15 : i32
    scf.if %34 {
      %c0_16 = arith.constant 0 : index
      %c0_17 = arith.constant 0 : index
      %35 = vector.load %arg8[%c0_16, %c0_17] : memref<8x32xf32, #tpu.memory_space<vmem>>, vector<8x32xf32>
      %c0_18 = arith.constant 0 : index
      %c0_19 = arith.constant 0 : index
      %36 = vector.load %arg7[%c0_18, %c0_19] : memref<8x32xf32, #tpu.memory_space<vmem>>, vector<8x32xf32>
      tpu.vector_store %arg7[%c0_18, %c0_19], %35 {strides = array<i32>} : memref<8x32xf32, #tpu.memory_space<vmem>>, vector<8x32xf32>,
    } else {
    }
    return
  }
  func.func @transform_0(%arg0: i32, %arg1: i32) -> (i32, i32) {
    %c0_i32 = arith.constant 0 : i32
    %c0_i32_0 = arith.constant 0 : i32
    return %arg0, %c0_i32 : i32, i32
  }
  func.func @transform_1(%arg0: i32, %arg1: i32) -> (i32, i32) {
    %c0_i32 = arith.constant 0 : i32
    %c0_i32_0 = arith.constant 0 : i32
    %c0_i32_1 = arith.constant 0 : i32
    return %c0_i32, %c0_i32_0 : i32, i32
  }
  func.func @transform_2(%arg0: i32, %arg1: i32) -> (i32, i32) {
    %c0_i32 = arith.constant 0 : i32
    %c0_i32_0 = arith.constant 0 : i32
    %c0_i32_1 = arith.constant 0 : i32
    return %c0_i32, %c0_i32_0 : i32, i32
  }
  func.func @transform_3(%arg0: i32, %arg1: i32) -> (i32, i32) {
    %c0_i32 = arith.constant 0 : i32
    %c0_i32_0 = arith.constant 0 : i32
    %c0_i32_1 = arith.constant 0 : i32
    return %c0_i32, %c0_i32_0 : i32, i32
  }
  func.func @transform_4(%arg0: i32, %arg1: i32) -> (i32, i32) {
    %c0_i32 = arith.constant 0 : i32
    %c0_i32_0 = arith.constant 0 : i32
    %c0_i32_1 = arith.constant 0 : i32
    return %c0_i32, %c0_i32_0 : i32, i32
  }
  func.func @transform_5(%arg0: i32, %arg1: i32) -> (i32, i32) {
    %c0_i32 = arith.constant 0 : i32
    %c0_i32_0 = arith.constant 0 : i32
    return %arg0, %c0_i32 : i32, i32
  }
}

</mosaic_0001>

<bundles_post_ra>
// kernel: tpu_custom_call.1
= control target key start
LH: loop header
LB: loop body
LE: loop exit
PB: predicated region body
PF: predicated region fallthrough
CT: control target
= control target key end

     0   :  { %10 = vsyncpa [#allocation4], 0  ;;  %s993_s0 = inlined_call_operand.vmem [shape: f32[16,32], index: 0, kind: input, shape index: {}]   ;;  %s994_s1 = inlined_call_operand.vmem [shape: f32[32,128], index: 1, kind: input, shape index: {}]   ;;  %s995_s2 = inlined_call_operand.vmem [shape: f32[1,128], index: 2, kind: input, shape index: {}]   ;;  %s996_s3 = inlined_call_operand.vmem [shape: f32[128,32], index: 3, kind: input, shape index: {}]   ;;  %s997_s4 = inlined_call_operand.vmem [shape: f32[1,32], index: 4, kind: input, shape index: {}]   ;;  %s998_s5 = inlined_call_operand.hbm [shape: f32[16,32], index: 5, kind: output, shape index: {}]  }
   0x1   :  { %12 = vsyncpa [#allocation4 + $0x1], 0  ;;  %s811_s18 = smov 0   ;;  %s813_s19 = smov 0  }
   0x2   :  { %s815_s20 = smov 0   ;;  %s817_s21 = smov 0  }
   0x3   :  { %s819_s22 = smov 0   ;;  %s821_s23 = smov 0  }
   0x4 LB: > { %s525_s24 = sadd.s32 4294967295, %s775_s23   ;;  %s526_s25 = sadd.s32 4294967294, %s775_s23   ;;  %s775_s23 = sphi %s821_s23, %s18_s23   ;;  %s771_s22 = sphi %s819_s22, %s1005_s22   ;;  %s767_s21 = sphi %s817_s21, %s1004_s21   ;;  %s763_s20 = sphi %s815_s20, %s1003_s20   ;;  %s759_s19 = sphi %s813_s19, %s1002_s19   ;;  %s755_s18 = sphi %s811_s18, %s1001_s18  }
   0x5   : > { %s30_s26 = sadd.s32 1, %s771_s22  ;;  %s147_s27 = sadd.s32 1, %s763_s20 }
   0x6   : > { %p32_p0 = scmp.ge.s32.totalorder %s30_s26, 2  ;;  %p157_p1 = scmp.ne.s32.totalorder %s763_s20, %s759_s19 }
   0x7   : > { %p158_p2 = scmp.eq.s32.totalorder %s525_s24, 1  ;;  %p163_p3 = scmp.ne.s32.totalorder %s759_s19, %s755_s18 }
   0x8   : > { %s1007_s26 = smov (%p32_p0, %s30_s26), 0  ;;  %p164_p5 = scmp.eq.s32.totalorder %s526_s25, 1 }
   0x9   : > { %p851_p4 = por %p158_p2, %p157_p1  ;;  %s144_s29 = ssub.s32 %s771_s22, %s1007_s26 }
   0xa   : > { %p529_p6 = scmp.ge.s32.totalorder %s775_s23, 1  ;;  %p145_p7 = scmp.eq.s32.totalorder %s144_s29, 0 }
   0xb   : > { %p858_p8 = por %p164_p5, %p163_p3  ;;  %p201_p9 = scmp.lt.s32.totalorder %s775_s23, 3 }
   0xc   : > { %s864_s6 = scalar_select %p145_p7, %s763_s20, %s147_s27  }
   0xd   : > { %p202_p10 = pnand %p529_p6, %p201_p9 }
   0xe   : > { %v249_v0 = vld [vmem:[%s994_s1] sm:$0xff] (!%p202_p10)  ;;  %v250_v1 = vld [vmem:[%s994_s1 + $0x8] sm:$0xff] (!%p202_p10)  ;;  %v251_v2 = vld [vmem:[%s994_s1 + $0x10] sm:$0xff] (!%p202_p10)  ;;  %v777_v3 = vmov (!%p202_p10), 0.0|0.0   ;;  %vm778_vm0 = vmmov (!%p202_p10), 0   ;;  %v779_v6 = vmov (!%p202_p10), 0.0  }
   0xf   : > { %205 = sbr.rel (%p202_p10) target bundleno = 502 (0x1f6), region = 40  ;;  %607 = vmatprep.subr.bf16.mxu0 (!%p202_p10), %v777_v3  ;;  %v608_v4 = vpack.c.bf16 (!%p202_p10), %v250_v1, %v249_v0  ;;  %v252_v5 = vld [vmem:[%s994_s1 + $0x18] sm:$0xff] (!%p202_p10)  ;;  %569 = vmatprep.mubr.msk.f32.mxu0 (!%p202_p10), %vm778_vm0, %v779_v6  ;;  %p228_p11 = scmp.lt.s32.totalorder (!%p202_p10), %s767_s21, 1  ;;  %v532_v7 = vld [vmem:[%s997_s4] ss:$0 sm:$0xff] (!%p202_p10)  ;;  %vm243_vm1 = vcmask (!%p202_p10), 261120  }
  0x10   : > { %v256_v8 = vld [vmem:[%s996_s3] sm:$0xff] (!%p202_p10)  ;;  %244 = vst.msk [vmem:[#allocation2] sm:$0xff] (!%p202_p10), %vm243_vm1, %v532_v7  ;;  %613 = vmatprep.subr.bf16.mxu1 (!%p202_p10), %v777_v3  ;;  %v257_v9 = vld [vmem:[%s996_s3 + $0x8] sm:$0xff] (!%p202_p10)  ;;  %604 = vmatprep.mubr.msk.f32.mxu1 (!%p202_p10), %vm778_vm0, %v779_v6  ;;  %v611_v10 = vpack.c.bf16 (!%p202_p10), %v252_v5, %v251_v2  ;;  %v258_v13 = vld [vmem:[%s996_s3 + $0x10] sm:$0xff] (!%p202_p10)  ;;  %s225_s11 = sand.u32 (!%p202_p10), 1, %s759_s19   ;;  %s536_s13 = sshll.u32 (!%p202_p10), %s767_s21, 7 }
  0x11   : > { %609 = vmatpush3.bf16.msra.mxu0 (!%p202_p10), %v608_v4  ;;  %v614_v11 = vpack.c.bf16 (!%p202_p10), %v257_v9, %v256_v8  ;;  %v259_v14 = vld [vmem:[%s996_s3 + $0x18] sm:$0xff] (!%p202_p10)  ;;  %v260_v16 = vld [vmem:[%s996_s3 + $0x20] sm:$0xff] (!%p202_p10)  ;;  %v261_v17 = vld [vmem:[%s996_s3 + $0x28] sm:$0xff] (!%p202_p10)  ;;  %s530_s12 = sshll.u32 (!%p202_p10), %s225_s11, 3  ;;  %s945_s24 = scalar_lea.hbm (!%p202_p10), %s998_s5, %s536_s13 }
  0x12   : > { %610 = vmatprep.subr.bf16.mxu0 (!%p202_p10), %v777_v3  ;;  %v617_v15 = vpack.c.bf16 (!%p202_p10), %v259_v14, %v258_v13  ;;  %v620_v18 = vpack.c.bf16 (!%p202_p10), %v261_v17, %v260_v16  ;;  %v262_v19 = vld [vmem:[%s996_s3 + $0x30] sm:$0xff] (!%p202_p10)  ;;  %v263_v20 = vld [vmem:[%s996_s3 + $0x38] sm:$0xff] (!%p202_p10)  ;;  %v264_v22 = vld [vmem:[%s996_s3 + $0x40] sm:$0xff] (!%p202_p10)  ;;  %s227_s14 = scalar_lea.vmem (!%p202_p10), [#allocation3], %s530_s12  ;;  %s441_s25 = scalar_lea.sflag (!%p202_p10), [#allocation4], %s225_s11 }
  0x13   : > { %615 = vmatpush3.bf16.msra.mxu1 (!%p202_p10), %v614_v11  ;;  %v623_v21 = vpack.c.bf16 (!%p202_p10), %v263_v20, %v262_v19  ;;  %v265_v23 = vld [vmem:[%s996_s3 + $0x48] sm:$0xff] (!%p202_p10)  ;;  %v266_v25 = vld [vmem:[%s996_s3 + $0x50] sm:$0xff] (!%p202_p10)  ;;  %v267_v26 = vld [vmem:[%s996_s3 + $0x58] sm:$0xff] (!%p202_p10)  ;;  %s454_s15 = sshll.u32 (!%p202_p10), %s227_s14, 4  ;;  %s947_s15 = int_to_ptr.vmem [resolvable:$true] %s454_s15 }
  0x14   : > { %616 = vmatprep.subr.bf16.mxu1 (!%p202_p10), %v777_v3  ;;  %v626_v24 = vpack.c.bf16 (!%p202_p10), %v265_v23, %v264_v22  ;;  %v629_v27 = vpack.c.bf16 (!%p202_p10), %v267_v26, %v266_v25  ;;  %v268_v28 = vld [vmem:[%s996_s3 + $0x60] sm:$0xff] (!%p202_p10)  ;;  %v269_v29 = vld [vmem:[%s996_s3 + $0x68] sm:$0xff] (!%p202_p10)  ;;  %v270_v31 = vld [vmem:[%s996_s3 + $0x70] sm:$0xff] (!%p202_p10)  ;;  %s697_s27 = scalar_lea.vmem (!%p202_p10), %s947_s15, 128 }
  0x15   : > { %612 = vmatpush3.bf16.msra.mxu0 (!%p202_p10), %v611_v10  ;;  %v632_v30 = vpack.c.bf16 (!%p202_p10), %v269_v29, %v268_v28  ;;  %v271_v32 = vld [vmem:[%s996_s3 + $0x78] sm:$0xff] (!%p202_p10)  ;;  %v533_v34 = vld [vmem:[%s995_s2] ss:$0 sm:$0xff] (!%p202_p10)  ;;  %p698_p12 = scmp.ne.s32.totalorder (!%p202_p10), %s947_s15, %s697_s27 }
  0x16   : > { %s229_s29 = scalar_select %p228_p11, %s767_s21, 1  ;;  %v635_v33 = vpack.c.bf16 %v271_v32, %v270_v31 }
  0x17   : > { %618 = vmatpush3.bf16.msra.mxu1 %v617_v15  ;;  %v362_v47 = vld [vmem:[#allocation2] sm:$0xff]  ;;  %p699_p13 = pnand %p698_p12, %p851_p4  ;;  %s780_s21 = smov [#allocation3]  }
  0x18   : > { %s531_s7 = sshll.u32 %s229_s29, 3  ;;  %619 = vmatprep.subr.bf16.mxu1 %v777_v3  ;;  %s701_s29 = sshll.u32 %s780_s21, 4  ;;  %s702_s29 = int_to_ptr.vmem [resolvable:$false] %s701_s29 }
  0x19   : > { %s231_s10 = scalar_lea.vmem %s993_s0, %s531_s7  ;;  %p700_p0 = pneg %p699_p13 }
  0x1a   : > { %v272_v12 = vld [vmem:[%s231_s10] sm:$0xff]  ;;  %s703_s7 = scalar_lea.vmem %s702_s29, 256  ;;  %p704_p1 = scmp.lt.s32.totalorder %s947_s15, %s702_s29 }
  0x1b   : > { %570 = vmatmul.mubr.msk.f32.vlgmr.msra.gmra.mrb[0].mxu0 %vm243_vm1, %v272_v12  ;;  %621 = vmatpush3.bf16.msra.mxu1 %v620_v18  ;;  %p705_p2 = scmp.lt.s32.totalorder %s703_s7, %s697_s27 }
  0x1c   : > { %622 = vmatprep.subr.bf16.mxu1 %v777_v3 }
  0x1d   : > { %p706_p3 = por %p705_p2, %p704_p1 }
  0x1f   : > { %624 = vmatpush3.bf16.msra.mxu1 %v623_v21  ;;  %p707_p5 = pnand %p706_p3, %p700_p0 }
  0x20   : > { %625 = vmatprep.subr.bf16.mxu1 %v777_v3 }
  0x23   : > { %627 = vmatpush3.bf16.msra.mxu1 %v626_v24 }
  0x24   : > { %628 = vmatprep.subr.bf16.mxu1 %v777_v3 }
  0x27   : > { %630 = vmatpush3.bf16.msra.mxu1 %v629_v27 }
  0x28   : > { %631 = vmatprep.subr.bf16.mxu1 %v777_v3 }
  0x2b   : > { %633 = vmatpush3.bf16.msra.mxu1 %v632_v30 }
  0x2c   : > { %634 = vmatprep.subr.bf16.mxu1 %v777_v3 }
  0x2f   : > { %636 = vmatpush3.bf16.msra.mxu1 %v635_v33 }
  0xee   : > { %v349_v35 = vpop.f32.mrb[0].mxu0 }
  0xef   : > { %v350_v36 = vadd.f32 %v533_v34, %v349_v35  ;;  %v571_v37 = vpop.f32.mrb[1].mxu0 }
  0xf1   : > { %v354_v38 = vmul.f32 %v350_v36, %v350_v36  ;;  %v353_v44 = vmul.f32 0.5, %v350_v36 }
  0xf3   : > { %v355_v39 = vmul.f32 %v354_v38, %v350_v36 }
  0xf5   : > { %v356_v40 = vmul.f32 0.044715, %v355_v39 }
  0xf7   : > { %v357_v41 = vadd.f32 %v356_v40, %v350_v36 }
  0xf9   : > { %v358_v42 = vmul.f32 0.7978846, %v357_v41 }
  0xfb   : > { %695 = vtanh.f32 %v358_v42 }
 0x105   : > { %v696_v43 = vpop.eup %695 }
 0x106   : > { %v360_v45 = vadd.f32 1.0, %v696_v43 }
 0x108   : > { %v361_v46 = vmul.f32 %v360_v45, %v353_v44 }
 0x10a   : > { %605 = vmatmul.mubr.f32.vlgmr.msra.gmra.mrb[0].mxu1 %v361_v46 }
 0x1dd   : > { %v429_v48 = vpop.f32.mrb[0].mxu1 }
 0x1de   : > { %v433_v49 = vadd.f32 %v429_v48, %v362_v47  ;;  %v606_v50 = vpop.f32.mrb[1].mxu1 }
 0x1e0   : > { %434 = vst.msk [vmem:[#allocation2] sm:$0xff] %vm243_vm1, %v433_v49 }
 0x1e7   : > { %v438_v51 = vld [vmem:[#allocation2] sm:$0xff] }
 0x1e8   : > { %439 = vst.msk [vmem:[%s227_s14] sm:$0xff] %vm243_vm1, %v438_v51 }
 0x1e9   : > { %710 = shalt.err (!%p707_p5)
}
 0x1ea   : > { %s711_s8 = scalar_lea.hbm %s945_s24, 128  ;;  %s715_s11 = scalar_lea.hbm %s998_s5, 256 }
 0x1eb   : > { %p712_p6 = scmp.ne.s32.totalorder %s945_s24, %s711_s8  ;;  %p716_p10 = scmp.lt.u32.totalorder %s945_s24, %s998_s5 }
 0x1ec   : > { %p717_p11 = scmp.lt.u32.totalorder %s715_s11, %s711_s8  ;;  %p719_p13 = scmp.lt.u32.totalorder %s711_s8, %s945_s24 }
 0x1ed   : > { %p713_p7 = pnand %p712_p6, %p851_p4 }
 0x1ee   : > { %p718_p12 = por %p717_p11, %p716_p10 }
 0x1ef   : > { %p714_p9 = pneg %p713_p7 }
 0x1f0   : > { %p720_p0 = por %p719_p13, %p718_p12 }
 0x1f2   : > { %p721_p1 = pnand %p720_p0, %p714_p9 }
 0x1f4   : > { %724 = shalt.err (!%p721_p1)
}
 0x1f5   : > { %637 = dma.vmem_to_hbm [thread:$0]  (%p851_p4), %s947_s15, 128, %s945_s24, %s441_s25  }
 0x1f6 PF: > { %p643_p2 = scmp.ge.s32.totalorder %s775_s23, 2  ;;  %s466_s14 = sand.u32 1, %s755_s18  }
 0x1f7   : > { %s467_s16 = scalar_lea.sflag [#allocation4], %s466_s14 }
 0x1f8   : > { %p640_p3 = pnand %p643_p2, %p858_p8 }
 0x1fa   : > { %750 = dma.done.wait (!%p640_p3), %s467_s16, 128  }
 0x1fb   : > { %752 = vsyncadd (!%p640_p3), %s467_s16, 4294967168  ;;  %s18_s23 = sadd.s32 1, %s775_s23   ;;  %s1001_s18 = smov %s759_s19 }
 0x1fc   : > { %p15_p5 = scmp.ge.s32.totalorder %s18_s23, 4   ;;  %s1002_s19 = smov %s763_s20 }
 0x1fd   : > { %s1003_s20 = smov %s864_s6  ;;  %s1004_s21 = smov %s771_s22 }
 0x1fe   : > { %s1005_s22 = smov %s1007_s26  ;;  %17 = sbr.rel (!%p15_p5) target bundleno = 4 (0x4), region = 86 }
 0x205   :  { %472 = vsyncpa [#allocation4], 1 }
 0x206   :  { %474 = vsyncpa [#allocation4 + $0x1], 1 }

</bundles_post_ra>
